<compile_context>
chip_gen: v7x
topology: tpu7x:2x2x1
jax: 0.10.0
libtpu: 0.0.40
codegen_flags: <defaults>
</compile_context>

<pallas_src>
import jax
import jax.numpy as jnp
from jax.experimental import pallas as pl
from jax.experimental.pallas import tpu as pltpu


_LANES = 128
# ~2 MiB per input tile => 3 arrays x 2 pipeline buffers ~= 12 MiB VMEM,
# within v5e's 16 MiB scoped default and v7x's 32 MiB scoped default.
_TARGET_TILE_BYTES = 2 << 20


def _sublanes_for(dtype) -> int:
    # Sub-32-bit dtypes pack along sublanes: 8 rows (f32), 16 (bf16), 32 (i8/fp8).
    return {4: 8, 2: 16, 1: 32}.get(jnp.dtype(dtype).itemsize, 8)


# ----------------------- Fused pointwise residual kernel ------------------ #

def _fused_pointwise_residual_kernel(x_ref, w_ref, b_ref, o_ref):
    # Single pass: out = gelu(x * w[row] + b[row]) + x on the (tr, cols) tile.
    x = x_ref[...]
    o_ref[...] = jax.nn.gelu(x * w_ref[...] + b_ref[...], approximate=True) + x


@jax.jit
def _fused_pointwise_residual(x: jax.Array, weight: jax.Array, bias: jax.Array):
    """Residual(per-channel affine + GELU) fused into one Pallas pass (NCHW)."""
    n_b, n_c, h, w = x.shape
    rows, cols = n_b * n_c, h * w

    x2 = x.reshape(rows, cols)                       # lane-dense slab, free reshape
    w2 = jnp.tile(weight.astype(x.dtype), n_b).reshape(rows, 1)
    b2 = jnp.tile(bias.astype(x.dtype), n_b).reshape(rows, 1)

    sub = _sublanes_for(x.dtype)
    itemsize = jnp.dtype(x.dtype).itemsize
    if rows % sub != 0 or rows * cols * itemsize <= _TARGET_TILE_BYTES:
        tr = rows                                    # single block covers everything
    else:
        tr = min(rows, max(sub, (_TARGET_TILE_BYTES // (cols * itemsize)) // sub * sub))
        while rows % tr != 0:                        # rows % sub == 0 -> terminates at >= sub
            tr -= sub

    out2 = pl.pallas_call(
        _fused_pointwise_residual_kernel,
        out_shape=jax.ShapeDtypeStruct((rows, cols), x.dtype),
        grid_spec=pltpu.PrefetchScalarGridSpec(
            num_scalar_prefetch=0,
            grid=(rows // tr,),
            in_specs=[
                pl.BlockSpec((tr, cols), lambda i: (i, 0)),
                pl.BlockSpec((tr, 1), lambda i: (i, 0)),
                pl.BlockSpec((tr, 1), lambda i: (i, 0)),
            ],
            out_specs=pl.BlockSpec((tr, cols), lambda i: (i, 0)),
        ),
        compiler_params=pltpu.CompilerParams(
            dimension_semantics=("parallel",),       # lets v7x's 2 TCs split the grid
        ),
    )(x2, w2, b2)

    return out2.reshape(n_b, n_c, h, w)


# --------------------------- Generic residual add ------------------------- #

def _residual_add_kernel(fx_ref, x_ref, o_ref):
    # Elementwise residual: out = fn(x) + x on the current (tr, cols) tile.
    o_ref[...] = fx_ref[...] + x_ref[...]


@jax.jit
def _residual_add(fx: jax.Array, x: jax.Array) -> jax.Array:
    """Pallas-backed elementwise add of fn(x) and the skip connection x."""
    assert fx.shape == x.shape, (fx.shape, x.shape)
    assert fx.dtype == x.dtype, (fx.dtype, x.dtype)

    orig_shape = x.shape
    n = x.size
    sub = _sublanes_for(x.dtype)
    itemsize = jnp.dtype(x.dtype).itemsize

    # Tiny inputs: dispatch + pipeline warmup dwarfs the add; let XLA fuse it.
    if n < sub * _LANES:
        return fx + x

    # Lane-dense slab: widest power-of-two lane count such that one sublane
    # group of rows stays <= 64 KiB and the slab still has >= `sub` rows.
    cols = _LANES
    while (2 * cols) * sub * itemsize <= (64 << 10) and (2 * cols) * sub <= n:
        cols *= 2

    rows_needed = pl.cdiv(n, cols)
    # Row tile: ~2 MiB per input tile, rounded to the sublane packing unit.
    tr = min(rows_needed, max(sub, _TARGET_TILE_BYTES // (cols * itemsize)))
    tr = max(sub, (tr // sub) * sub)

    rows = pl.cdiv(rows_needed, tr) * tr             # multiple of the chosen block
    pad = rows * cols - n

    fx_flat = fx.reshape(-1)
    x_flat = x.reshape(-1)
    if pad:                                          # pay the copy only when ragged
        fx_flat = jnp.pad(fx_flat, (0, pad))
        x_flat = jnp.pad(x_flat, (0, pad))

    fx2 = fx_flat.reshape(rows, cols)
    x2 = x_flat.reshape(rows, cols)

    out2 = pl.pallas_call(
        _residual_add_kernel,
        out_shape=jax.ShapeDtypeStruct((rows, cols), x.dtype),
        grid_spec=pltpu.PrefetchScalarGridSpec(
            num_scalar_prefetch=0,
            grid=(rows // tr,),
            in_specs=[
                pl.BlockSpec((tr, cols), lambda i: (i, 0)),
                pl.BlockSpec((tr, cols), lambda i: (i, 0)),
            ],
            out_specs=pl.BlockSpec((tr, cols), lambda i: (i, 0)),
        ),
        compiler_params=pltpu.CompilerParams(
            dimension_semantics=("parallel",),
        ),
        input_output_aliases={0: 0},                 # output reuses fn(x)'s buffer
    )(fx2, x2)

    out_flat = out2.reshape(-1)
    if pad:
        out_flat = out_flat[:n]
    return out_flat.reshape(orig_shape)


# ------------------------------ Module ports ------------------------------ #

class Residual:
    """Generic JAX/Pallas port of `Residual(nn.Module)`: forward(x) = fn(x) + x."""

    # TODO(synk): arbitrary user `fn` cannot be lowered into the kernel in
    # general; it runs as plain JAX glue and only the residual add is Pallas.
    def __init__(self, fn):
        self.fn = fn

    def __call__(self, x, *args, **kwargs):
        fx = self.fn(x, *args, **kwargs)
        return _residual_add(fx, x)


class FusedPointwiseResidual:
    """Residual(per-channel affine + GELU block): whole forward in one Pallas pass."""

    def __init__(self, weight: jax.Array, bias: jax.Array):
        self.weight = weight   # [C]
        self.bias = bias       # [C]

    def __call__(self, x):     # x: [N, C, H, W]
        return _fused_pointwise_residual(x, self.weight, self.bias)


# --------------------------------- main ----------------------------------- #

if __name__ == "__main__":
    key = jax.random.PRNGKey(0)
    k_x, k_w, k_b = jax.random.split(key, 3)

    N, C, H, W = 2, 4, 16, 16          # NCHW, matches PyTorch conv convention
    x = jax.random.normal(k_x, (N, C, H, W), jnp.float32)
    weight = jax.random.normal(k_w, (C,), jnp.float32) * 0.1 + 1.0
    bias = jax.random.normal(k_b, (C,), jnp.float32) * 0.1

    # Plain-JAX reference for Residual(pointwise affine + GELU).
    def fn(t):
        return jax.nn.gelu(
            t * weight.reshape(1, -1, 1, 1) + bias.reshape(1, -1, 1, 1),
            approximate=True,
        )

    ref = fn(x) + x

    # 1) Fully fused path (fn's pointwise tail + residual in one Pallas pass).
    fused = FusedPointwiseResidual(weight, bias)
    out_fused = jax.block_until_ready(fused(x))

    # 2) Generic Residual wrapper (fn as JAX glue, Pallas residual add).
    residual = Residual(fn)
    out_generic = jax.block_until_ready(residual(x))

    assert out_fused.shape == x.shape and out_fused.dtype == x.dtype
    assert out_generic.shape == x.shape and out_generic.dtype == x.dtype
    assert jnp.allclose(out_fused, ref, atol=2e-5, rtol=2e-5), \
        float(jnp.max(jnp.abs(out_fused - ref)))
    assert jnp.allclose(out_generic, ref, atol=2e-5, rtol=2e-5), \
        float(jnp.max(jnp.abs(out_generic - ref)))

    print("KERNEL_OK")
</pallas_src>

<mosaic_0001>
module attributes {stable_mosaic.version = 11 : i64} {
  func.func @_fused_pointwise_residual_kernel(%arg0: i32, %arg1: memref<8x256xf32, #tpu.memory_space<vmem>>, %arg2: memref<8x1xf32, #tpu.memory_space<vmem>>, %arg3: memref<8x1xf32, #tpu.memory_space<vmem>>, %arg4: memref<8x256xf32, #tpu.memory_space<vmem>>) attributes {dimension_semantics = [#tpu.dimension_semantics<parallel>], iteration_bounds = array<i64: 1>, scalar_prefetch = 0 : i64, scratch_operands = 0 : i64, tpu.core_type = #tpu.core_type<tc>, window_params = [{transform_indices = @transform_0, window_bounds = array<i64: 8, 256>}, {transform_indices = @transform_1, window_bounds = array<i64: 8, 1>}, {transform_indices = @transform_2, window_bounds = array<i64: 8, 1>}, {transform_indices = @transform_3, window_bounds = array<i64: 8, 256>}]} {
    %c0 = arith.constant 0 : index
    %c0_0 = arith.constant 0 : index
    %0 = vector.load %arg1[%c0, %c0_0] : memref<8x256xf32, #tpu.memory_space<vmem>>, vector<8x256xf32>
    %c0_1 = arith.constant 0 : index
    %c0_2 = arith.constant 0 : index
    %1 = vector.load %arg2[%c0_1, %c0_2] : memref<8x1xf32, #tpu.memory_space<vmem>>, vector<8x1xf32>
    %2 = vector.broadcast %1 : vector<8x1xf32> to vector<8x256xf32>
    %3 = arith.mulf %0, %2 : vector<8x256xf32>
    %c0_3 = arith.constant 0 : index
    %c0_4 = arith.constant 0 : index
    %4 = vector.load %arg3[%c0_3, %c0_4] : memref<8x1xf32, #tpu.memory_space<vmem>>, vector<8x1xf32>
    %5 = vector.broadcast %4 : vector<8x1xf32> to vector<8x256xf32>
    %6 = arith.addf %3, %5 : vector<8x256xf32>
    %7 = arith.mulf %6, %6 : vector<8x256xf32>
    %8 = arith.mulf %6, %7 : vector<8x256xf32>
    %cst = arith.constant 4.471500e-02 : f32
    %9 = vector.broadcast %cst : f32 to vector<8x256xf32>
    %10 = arith.mulf %9, %8 : vector<8x256xf32>
    %11 = arith.addf %6, %10 : vector<8x256xf32>
    %cst_5 = arith.constant 0.797884583 : f32
    %12 = vector.broadcast %cst_5 : f32 to vector<8x256xf32>
    %13 = arith.mulf %12, %11 : vector<8x256xf32>
    %14 = math.tanh %13 : vector<8x256xf32>
    %cst_6 = arith.constant 1.000000e+00 : f32
    %15 = vector.broadcast %cst_6 : f32 to vector<8x256xf32>
    %16 = arith.addf %15, %14 : vector<8x256xf32>
    %cst_7 = arith.constant 5.000000e-01 : f32
    %17 = vector.broadcast %cst_7 : f32 to vector<8x256xf32>
    %18 = arith.mulf %17, %16 : vector<8x256xf32>
    %19 = arith.mulf %6, %18 : vector<8x256xf32>
    %20 = arith.addf %19, %0 : vector<8x256xf32>
    %c0_8 = arith.constant 0 : index
    %c0_9 = arith.constant 0 : index
    %21 = vector.load %arg4[%c0_8, %c0_9] : memref<8x256xf32, #tpu.memory_space<vmem>>, vector<8x256xf32>
    tpu.vector_store %arg4[%c0_8, %c0_9], %20 {strides = array<i32>} : memref<8x256xf32, #tpu.memory_space<vmem>>, vector<8x256xf32>,
    return
  }
  func.func @transform_0(%arg0: i32) -> (i32, i32) {
    %c0_i32 = arith.constant 0 : i32
    %c0_i32_0 = arith.constant 0 : i32
    return %arg0, %c0_i32 : i32, i32
  }
  func.func @transform_1(%arg0: i32) -> (i32, i32) {
    %c0_i32 = arith.constant 0 : i32
    %c0_i32_0 = arith.constant 0 : i32
    return %arg0, %c0_i32 : i32, i32
  }
  func.func @transform_2(%arg0: i32) -> (i32, i32) {
    %c0_i32 = arith.constant 0 : i32
    %c0_i32_0 = arith.constant 0 : i32
    return %arg0, %c0_i32 : i32, i32
  }
  func.func @transform_3(%arg0: i32) -> (i32, i32) {
    %c0_i32 = arith.constant 0 : i32
    %c0_i32_0 = arith.constant 0 : i32
    return %arg0, %c0_i32 : i32, i32
  }
}

</mosaic_0001>

<bundles_post_ra>
// kernel: tile.13
= control target key start
LH: loop header
LB: loop body
LE: loop exit
PB: predicated region body
PF: predicated region fallthrough
CT: control target
= control target key end

     0   :  { %s22_s0 = inlined_call_operand.vmem [shape: f32[4], index: 0, kind: input, shape index: {}]   ;;  %s23_s1 = inlined_call_operand.vmem [shape: f32[2,4], index: 1, kind: output, shape index: {}]  }
   0x1   :  { %v4_v0 = vld [vmem:[%s22_s0] ss:$0 sm:$0xff] }
   0x2   :  { %5 = vst [vmem:[%s23_s1] sm:$0x3] %v4_v0 }

// kernel: tile.1
= control target key start
LH: loop header
LB: loop body
LE: loop exit
PB: predicated region body
PF: predicated region fallthrough
CT: control target
= control target key end

     0   :  { %s34_s8 = smov 125   ;;  %vm7_vm0 = vcmask 7168   ;;  %s35_s11 = smov 126   ;;  %s61_s0 = inlined_call_operand.vmem [shape: f32[2,4], index: 0, kind: input, shape index: {}]   ;;  %s62_s1 = inlined_call_operand.vmem [shape: f32[8,1], index: 1, kind: output, shape index: {}]  }
   0x1   :  { %v4_v0 = vld [vmem:[%s61_s0] sm:$0x3]  ;;  %s33_s0 = smov 127  }
   0x2   :  { %5 = vst [vmem:[#allocation0] sm:$0x3] %v4_v0 }
   0x9   :  { %v9_v1 = vld [vmem:[#allocation0] sm:$0x3]  }
   0xa   :  { %v21_v2 = vld [vmem:[#allocation0] sm:$0x3]   ;;  %10 = vrot.lane.b32.xlu0 %v9_v1, %s33_s0 }
   0xb   :  { %22 = vrot.lane.b32.xlu1 %v21_v2, %s34_s8  ;;  %v6_v3 = vld [vmem:[#allocation0] sm:$0x3]  }
   0xc   :  { %v15_v4 = vld [vmem:[#allocation0] sm:$0x3]   ;;  %8 = vst.msk [vmem:[%s62_s1] ss:$4 sm:$0x3] %vm7_vm0, %v6_v3  }
   0xe   :  { %16 = vrot.lane.b32.xlu0 %v15_v4, %s35_s11 }
  0x7c   :  { %v11_v5 = vpop.permute.xlu0 %10  }
  0x7d   :  { %v23_v6 = vpop.permute.xlu1 %22   ;;  %27 = vst.msk [vmem:[%s62_s1 + $0x1] ss:$4 sm:$0x3] %vm7_vm0, %v11_v5  }
  0x7e   :  { %29 = vst.msk [vmem:[%s62_s1 + $0x3] ss:$4 sm:$0x3] %vm7_vm0, %v23_v6  }
  0x80   :  { %v17_v7 = vpop.permute.xlu0 %16  }
  0x81   :  { %28 = vst.msk [vmem:[%s62_s1 + $0x2] ss:$4 sm:$0x3] %vm7_vm0, %v17_v7  }

// kernel: _fused_pointwise_residual.1
= control target key start
LH: loop header
LB: loop body
LE: loop exit
PB: predicated region body
PF: predicated region fallthrough
CT: control target
= control target key end

     0   :  { %v64_v0 = vmov 0   ;;  %s103_s1 = inlined_call_operand.vmem [shape: f32[8,1], index: 1, kind: input, shape index: {}]   ;;  %s104_s2 = inlined_call_operand.vmem [shape: f32[8,1], index: 2, kind: input, shape index: {}]   ;;  %s105_s0 = inlined_call_operand.vmem [shape: f32[8,256], index: 0, kind: input, shape index: {}]   ;;  %s106_s3 = inlined_call_operand.vmem [shape: f32[8,256], index: 3, kind: output, shape index: {}]  }
   0x1   :  { %59 = vset.pattern.permute.xlu0 %v64_v0  ;;  %v16_v1 = vld [vmem:[%s103_s1] sm:$0xff]  ;;  %v15_v5 = vld [vmem:[%s105_s0 + $0x8] sm:$0xff] }
   0x2   :  { %19 = vperm.xlu0 %59, %v16_v1   ;;  %v24_v2 = vld [vmem:[%s104_s2] sm:$0xff] }
   0x3   :  { %v14_v4 = vld [vmem:[%s105_s0] sm:$0xff] }
   0x6   :  { %27 = vperm.xlu0 %59, %v24_v2  }
  0x81   :  { %v20_v3 = vpop.permute.xlu0 %19 }
  0x82   :  { %v22_v6 = vmul.f32 %v20_v3, %v14_v4  ;;  %v23_v7 = vmul.f32 %v20_v3, %v15_v5 }
  0x85   :  { %v28_v8 = vpop.permute.xlu0 %27 }
  0x86   :  { %v30_v9 = vadd.f32 %v28_v8, %v22_v6  ;;  %v31_v10 = vadd.f32 %v28_v8, %v23_v7 }
  0x88   :  { %v32_v11 = vmul.f32 %v30_v9, %v30_v9  ;;  %v33_v12 = vmul.f32 %v31_v10, %v31_v10 }
  0x8a   :  { %v34_v13 = vmul.f32 %v32_v11, %v30_v9  ;;  %v35_v14 = vmul.f32 %v33_v12, %v31_v10 }
  0x8c   :  { %v36_v15 = vmul.f32 0.044715, %v34_v13  ;;  %v37_v16 = vmul.f32 0.044715, %v35_v14 }
  0x8e   :  { %v38_v17 = vadd.f32 %v36_v15, %v30_v9  ;;  %v39_v18 = vadd.f32 %v37_v16, %v31_v10 }
  0x90   :  { %v40_v19 = vmul.f32 0.7978846, %v38_v17  ;;  %v41_v20 = vmul.f32 0.7978846, %v39_v18 }
  0x92   :  { %60 = vtanh.f32 %v40_v19 }
  0x93   :  { %62 = vtanh.f32 %v41_v20 }
  0x9c   :  { %v61_v21 = vpop.eup %60 }
  0x9d   :  { %v63_v22 = vpop.eup %62  ;;  %v44_v23 = vadd.f32 1.0, %v61_v21 }
  0x9e   :  { %v45_v24 = vadd.f32 1.0, %v63_v22 }
  0x9f   :  { %v46_v25 = vmul.f32 0.5, %v44_v23 }
  0xa0   :  { %v47_v26 = vmul.f32 0.5, %v45_v24 }
  0xa1   :  { %v48_v27 = vmul.f32 %v46_v25, %v30_v9 }
  0xa2   :  { %v49_v28 = vmul.f32 %v47_v26, %v31_v10 }
  0xa3   :  { %v50_v29 = vadd.f32 %v48_v27, %v14_v4 }
  0xa4   :  { %v51_v30 = vadd.f32 %v49_v28, %v15_v5 }
  0xa5   :  { %52 = vst [vmem:[%s106_s3] sm:$0xff] %v50_v29 }
  0xa6   :  { %53 = vst [vmem:[%s106_s3 + $0x8] sm:$0xff] %v51_v30 }

</bundles_post_ra>
